<compile_context>
chip_gen: v6e
topology: v6e:2x2x1
jax: 0.10.0
libtpu: 0.0.40
codegen_flags: <defaults>
</compile_context>

<pallas_src>
import functools
import math

import jax
import jax.numpy as jnp
from jax.experimental import pallas as pl
from jax.experimental.pallas import tpu as pltpu

LANE = 128


def _round_up(n, m):
    return ((n + m - 1) // m) * m


def attmodule_kernel(x_ref, f_ref, mcol_ref, mrow_ref,
                     wt_ref, bff_ref, wqkv_ref, bqkv_ref,
                     wv_ref, bv_ref, wco_ref, bco_ref, wo_ref, bo_ref,
                     o_ref, *scratch,
                     dilation, alpha, stage, kp, q_tile, n_q):
    """One batch element per grid step; activations are (T, Cp) tiles."""
    x = x_ref[0]                       # (T, Cp) f32
    mcol = mcol_ref[0]                 # (T, 1)  f32  per-timestep mask (column form)
    mrow = mrow_ref[0]                 # (1, T)  f32  per-timestep mask (row form)
    T = x.shape[0]
    d = dilation

    # ---- ConvFeedForward: dilated conv (k=3, pad=d, dil=d) + ReLU ------------------
    # taps realized with XLU sublane rotations + row masks; three bf16 MXU matmuls
    # accumulating in f32 (no pad/concatenate copies).
    row = jax.lax.broadcasted_iota(jnp.int32, (T, 1), 0)
    xb = x.astype(jnp.bfloat16)
    if d < T:
        prev = jnp.where(row >= d, pltpu.roll(x, shift=d, axis=0), 0.0)
        nxt = jnp.where(row < T - d, pltpu.roll(x, shift=(T - d) % T, axis=0), 0.0)
        ff = (jnp.dot(prev.astype(jnp.bfloat16), wt_ref[0], preferred_element_type=jnp.float32)
              + jnp.dot(xb, wt_ref[1], preferred_element_type=jnp.float32)
              + jnp.dot(nxt.astype(jnp.bfloat16), wt_ref[2], preferred_element_type=jnp.float32))
    else:  # neighbours fully outside the sequence
        ff = jnp.dot(xb, wt_ref[1], preferred_element_type=jnp.float32)
    ff = jnp.maximum(ff + bff_ref[...], 0.0)                           # (T, Cp) f32

    # ---- InstanceNorm1d over time (biased variance, eps=1e-5, no affine) -----------
    mu = jnp.sum(ff, axis=0, keepdims=True) * (1.0 / T)
    cen = ff - mu
    var = jnp.sum(cen * cen, axis=0, keepdims=True) * (1.0 / T)
    nb16 = (cen * jax.lax.rsqrt(var + 1e-5)).astype(jnp.bfloat16)      # (T, Cp) bf16

    # ---- fused q/k(/v) projection (1/sqrt(cq) pre-folded into wq/bq on the host) ---
    qkv = jnp.dot(nb16, wqkv_ref[...], preferred_element_type=jnp.float32) + bqkv_ref[...]
    qb = qkv[:, :kp].astype(jnp.bfloat16)                              # (T, Kp)
    kb = qkv[:, kp:2 * kp].astype(jnp.bfloat16)                        # (T, Kp)
    if stage == "decoder":
        v = jnp.dot(f_ref[0], wv_ref[...], preferred_element_type=jnp.float32) + bv_ref[...]
    else:
        v = qkv[:, 2 * kp:]                                            # (T, Vp)
    # softmax key-mask folded into v:  (softmax(p)*mask) @ v == exp(p) @ (mask*v) * 1/sum
    vmask = (v * mcol).astype(jnp.bfloat16)                            # (T, Vp)
    logm = jnp.log(mrow + 1e-6)                                        # (1, T)

    def attend(q_tile_b16):
        e = jax.lax.dot_general(q_tile_b16, kb, (((1,), (1,)), ((), ())),
                                preferred_element_type=jnp.float32)    # (tq, T)
        s = e + logm
        p = jnp.exp(s - jnp.max(s, axis=-1, keepdims=True))
        inv_l = pl.reciprocal(jnp.sum(p, axis=-1, keepdims=True), approx=True)
        ctx = jnp.dot(p.astype(jnp.bfloat16), vmask, preferred_element_type=jnp.float32)
        return jnp.maximum(ctx * inv_l, 0.0)                           # (tq, Vp)

    if n_q == 1:
        ctx = attend(qb).astype(jnp.bfloat16)                          # (T, Vp)
    else:
        qbuf, ctxbuf = scratch                                         # (Tp,Kp) / (Tp,Vp) bf16
        qbuf[...] = jnp.zeros_like(qbuf)
        qbuf[0:T, :] = qb

        def body(i, carry):
            off = pl.multiple_of(i * q_tile, q_tile)
            ctxbuf[pl.ds(off, q_tile), :] = attend(
                qbuf[pl.ds(off, q_tile), :]).astype(jnp.bfloat16)
            return carry

        jax.lax.fori_loop(0, n_q, body, 0)
        ctx = ctxbuf[0:T, :]

    # ---- conv_out + AttLayer mask, residual, conv_1x1, final residual & mask -------
    att_out = jnp.dot(ctx, wco_ref[...], preferred_element_type=jnp.float32) + bco_ref[...]
    h = alpha * (att_out * mcol) + ff
    # TODO(synk): nn.Dropout(p=0.5) is identity in eval mode; training-mode dropout not implemented.
    out = jnp.dot(h.astype(jnp.bfloat16), wo_ref[...], preferred_element_type=jnp.float32) + bo_ref[...]
    o_ref[0] = ((x + out) * mcol).astype(o_ref.dtype)


def _pad2(a, rows, cols):
    a = jnp.asarray(a, jnp.float32)
    return jnp.pad(a, ((0, rows - a.shape[0]), (0, cols - a.shape[1])))


def _vmem_limit_bytes(T, Cp, n_proj, Vp, q_tile, n_q):
    t_pad = n_q * q_tile
    act = 4 * (10 * T * Cp + 2 * T * n_proj + 3 * q_tile * T + 8 * T)
    act += 2 * t_pad * (LANE + Vp)                                     # bf16 q/ctx staging buffers
    wts = 4 * (3 * Cp * Cp + Cp * n_proj + 2 * Cp * Vp + Cp * Cp + 8 * Cp)
    est = 2 * (act + wts)                                              # pipelining headroom
    try:
        cap = int(getattr(pltpu.get_tpu_info(), "vmem_capacity_bytes", 0))
    except Exception:
        cap = 0
    if cap <= 0:
        cap = 64 * 1024 * 1024                                         # conservative fallback
    return int(max(32 * 1024 * 1024, min(est, int(cap * 0.85))))


def attmodule_forward(x_nct, f_nct, mask_nct, params, *, dilation, alpha,
                      stage="encoder", att_type="normal_att", q_tile=128):
    """x_nct: (B, Cin, T), f_nct: (B, C, T) (decoder only), mask_nct: (B, Cm, T) -> (B, C, T)."""
    # TODO(synk): att_type='block_att' and 'sliding_att' branches are not implemented.
    assert att_type == "normal_att"
    assert stage in ("encoder", "decoder")

    B, Cin, T = x_nct.shape
    C = params["wo"].shape[0]
    Cq = params["wq"].shape[1]
    Cv = params["wv"].shape[1]
    assert Cin == C, "AttModule requires in_channels == out_channels"

    Cp = _round_up(C, LANE)                 # lane-dense channel dims
    Kp = _round_up(Cq, LANE)
    Vp = _round_up(Cv, LANE)

    q_tile = max(8, min(_round_up(q_tile, 8), _round_up(T, 8)))
    n_q = (T + q_tile - 1) // q_tile
    if n_q == 1:
        q_tile = T
    t_pad = n_q * q_tile

    # ---- activations: (B, T, C) layout, channels zero-padded to lane multiples ----
    x_btc = jnp.pad(jnp.transpose(x_nct, (0, 2, 1)).astype(jnp.float32),
                    ((0, 0), (0, 0), (0, Cp - Cin)))
    mcol = jnp.transpose(mask_nct[:, 0:1, :], (0, 2, 1)).astype(jnp.float32)   # (B, T, 1)
    mrow = mask_nct[:, 0:1, :].astype(jnp.float32)                             # (B, 1, T)
    if stage == "decoder":
        f_btc = jnp.pad(jnp.transpose(f_nct, (0, 2, 1)).astype(jnp.float32),
                        ((0, 0), (0, 0), (0, Cp - C))).astype(jnp.bfloat16)
    else:
        f_btc = jnp.zeros((B, 1, 1), jnp.bfloat16)                             # unused dummy

    # ---- weights: zero-padded to lane multiples, matmul operands in bf16 ----------
    wt = jnp.pad(jnp.asarray(params["wff"], jnp.float32),
                 ((0, 0), (0, Cp - Cin), (0, Cp - C))).astype(jnp.bfloat16)    # (3, Cp, Cp)
    bff = _pad2(params["bff"], 1, Cp)

    scale = 1.0 / math.sqrt(Cq)                                                # folded into q
    blocks_w = [_pad2(params["wq"] * scale, Cp, Kp), _pad2(params["wk"], Cp, Kp)]
    blocks_b = [_pad2(params["bq"] * scale, 1, Kp), _pad2(params["bk"], 1, Kp)]
    if stage == "encoder":
        blocks_w.append(_pad2(params["wv"], Cp, Vp))
        blocks_b.append(_pad2(params["bv"], 1, Vp))
        wv_arg = jnp.zeros((1, 1), jnp.bfloat16)                               # unused dummies
        bv_arg = jnp.zeros((1, 1), jnp.float32)
    else:
        wv_arg = _pad2(params["wv"], Cp, Vp).astype(jnp.bfloat16)
        bv_arg = _pad2(params["bv"], 1, Vp)
    wqkv = jnp.concatenate(blocks_w, axis=1).astype(jnp.bfloat16)
    bqkv = jnp.concatenate(blocks_b, axis=1)

    wco = _pad2(params["wco"], Vp, Cp).astype(jnp.bfloat16)
    bco = _pad2(params["bco"], 1, Cp)
    wo = _pad2(params["wo"], Cp, Cp).astype(jnp.bfloat16)
    bo = _pad2(params["bo"], 1, Cp)

    def full_spec(a):
        return pl.BlockSpec(a.shape, lambda b, _n=a.ndim: (0,) * _n)

    scratch_shapes = []
    if n_q > 1:
        scratch_shapes = [pltpu.VMEM((t_pad, Kp), jnp.bfloat16),
                          pltpu.VMEM((t_pad, Vp), jnp.bfloat16)]

    kernel = functools.partial(attmodule_kernel, dilation=dilation, alpha=alpha,
                               stage=stage, kp=Kp, q_tile=q_tile, n_q=n_q)

    out_btc = pl.pallas_call(
        kernel,
        out_shape=jax.ShapeDtypeStruct((B, T, Cp), jnp.float32),
        grid=(B,),
        in_specs=[
            pl.BlockSpec((1, T, Cp), lambda b: (b, 0, 0)),
            pl.BlockSpec((1,) + f_btc.shape[1:], lambda b: (b, 0, 0)),
            pl.BlockSpec((1, T, 1), lambda b: (b, 0, 0)),
            pl.BlockSpec((1, 1, T), lambda b: (b, 0, 0)),
            full_spec(wt), full_spec(bff),
            full_spec(wqkv), full_spec(bqkv),
            full_spec(wv_arg), full_spec(bv_arg),
            full_spec(wco), full_spec(bco),
            full_spec(wo), full_spec(bo),
        ],
        out_specs=pl.BlockSpec((1, T, Cp), lambda b: (b, 0, 0)),
        scratch_shapes=scratch_shapes,
        compiler_params=pltpu.CompilerParams(
            dimension_semantics=("parallel",),
            vmem_limit_bytes=_vmem_limit_bytes(T, Cp, wqkv.shape[1], Vp, q_tile, n_q)),
    )(x_btc, f_btc, mcol, mrow, wt, bff, wqkv, bqkv, wv_arg, bv_arg,
      wco, bco, wo, bo)

    return jnp.transpose(out_btc[:, :, :C], (0, 2, 1))                         # (B, C, T)


def init_params(key, in_channels, out_channels, r1, r2):
    """Conv weights stored pre-transposed for (T, C) layout: (Cin, Cout) per tap."""
    C_in, C = in_channels, out_channels
    Cq, Cv = in_channels // r1, out_channels // r2
    ks = jax.random.split(key, 12)

    def u(k, shape, fan_in):
        bound = 1.0 / jnp.sqrt(jnp.float32(fan_in))
        return jax.random.uniform(k, shape, jnp.float32, -bound, bound)

    return {
        "wff": u(ks[0], (3, C_in, C), 3 * C_in), "bff": u(ks[1], (1, C), 3 * C_in),
        "wq": u(ks[2], (C_in, Cq), C_in),        "bq": u(ks[3], (1, Cq), C_in),
        "wk": u(ks[4], (C_in, Cq), C_in),        "bk": u(ks[5], (1, Cq), C_in),
        "wv": u(ks[6], (C, Cv), C),              "bv": u(ks[7], (1, Cv), C),
        "wco": u(ks[8], (Cv, C), Cv),            "bco": u(ks[9], (1, C), Cv),
        "wo": u(ks[10], (C, C), C),              "bo": u(ks[11], (1, C), C),
    }


def attmodule_reference(x_nct, f_nct, mask_nct, params, *, dilation, alpha, stage="encoder"):
    """Pure-JAX f32 reference of the same forward math (sanity check)."""
    x = jnp.transpose(x_nct, (0, 2, 1)).astype(jnp.float32)                    # (B, T, Cin)
    mcol = jnp.transpose(mask_nct[:, 0:1, :], (0, 2, 1)).astype(jnp.float32)   # (B, T, 1)
    mrow = mask_nct[:, 0:1, :].astype(jnp.float32)                             # (B, 1, T)
    B, T, Cin = x.shape
    d = dilation
    wff = params["wff"]

    xp = jnp.pad(x, ((0, 0), (d, d), (0, 0)))
    ff = sum(jnp.einsum("btc,cf->btf", xp[:, k * d:k * d + T, :], wff[k])
             for k in range(3)) + params["bff"]
    ff = jnp.maximum(ff, 0.0)

    mu = jnp.mean(ff, axis=1, keepdims=True)
    var = jnp.mean((ff - mu) ** 2, axis=1, keepdims=True)
    norm = (ff - mu) / jnp.sqrt(var + 1e-5)

    q = jnp.einsum("btc,cq->btq", norm, params["wq"]) + params["bq"]
    k = jnp.einsum("btc,cq->btq", norm, params["wk"]) + params["bk"]
    v_in = jnp.transpose(f_nct, (0, 2, 1)).astype(jnp.float32) if stage == "decoder" else norm
    v = jnp.einsum("btc,cv->btv", v_in, params["wv"]) + params["bv"]

    cq = q.shape[-1]
    energy = jnp.einsum("biq,bjq->bij", q, k) / jnp.sqrt(jnp.float32(cq))
    att = jax.nn.softmax(energy + jnp.log(mrow + 1e-6), axis=-1) * mrow
    ctx = jnp.maximum(jnp.einsum("bij,bjv->biv", att, v), 0.0)
    att_out = (jnp.einsum("biv,vc->bic", ctx, params["wco"]) + params["bco"]) * mcol

    h = alpha * att_out + ff
    h = jnp.einsum("btc,cd->btd", h, params["wo"]) + params["bo"]
    return jnp.transpose((x + h) * mcol, (0, 2, 1))                            # (B, C, T)


if __name__ == "__main__":
    key = jax.random.PRNGKey(0)

    def run_case(name, B, C, T, r1, r2, dilation, alpha, stage, q_tile, case_key):
        kx, kf, kparam = jax.random.split(case_key, 3)
        mask = jnp.ones((B, C, T), jnp.float32)
        if B > 1:
            mask = mask.at[1, :, (2 * T) // 3:].set(0.0)   # ragged sequence in batch element 1
        x = jax.random.normal(kx, (B, C, T), jnp.float32) * mask[:, 0:1, :]
        f = jax.random.normal(kf, (B, C, T), jnp.float32)  # only used by decoder stage
        params = init_params(kparam, C, C, r1, r2)

        out = attmodule_forward(x, f, mask, params, dilation=dilation, alpha=alpha,
                                stage=stage, att_type="normal_att", q_tile=q_tile)
        out = jax.block_until_ready(out)
        ref = attmodule_reference(x, f, mask, params, dilation=dilation, alpha=alpha, stage=stage)
        assert out.shape == (B, C, T), name
        assert jnp.allclose(out, ref, atol=5e-2, rtol=5e-2), f"{name}: mismatch vs reference"

    k1, k2 = jax.random.split(key, 2)
    # small encoder case (single query tile path)
    run_case("encoder_small", B=2, C=32, T=16, r1=4, r2=2,
             dilation=2, alpha=0.7, stage="encoder", q_tile=128, case_key=k1)
    # decoder case exercising the query-tiled attention loop + tail padding
    run_case("decoder_tiled", B=2, C=32, T=80, r1=4, r2=2,
             dilation=4, alpha=1.0, stage="decoder", q_tile=32, case_key=k2)

    print("KERNEL_OK")
</pallas_src>

<mosaic_0001>
module attributes {stable_mosaic.version = 11 : i64} {
  func.func @attmodule_kernel(%arg0: i32, %arg1: memref<1x16x128xf32, #tpu.memory_space<vmem>>, %arg2: memref<1x1x1xbf16, #tpu.memory_space<vmem>>, %arg3: memref<1x16x1xf32, #tpu.memory_space<vmem>>, %arg4: memref<1x1x16xf32, #tpu.memory_space<vmem>>, %arg5: memref<3x128x128xbf16, #tpu.memory_space<vmem>>, %arg6: memref<1x128xf32, #tpu.memory_space<vmem>>, %arg7: memref<128x384xbf16, #tpu.memory_space<vmem>>, %arg8: memref<1x384xf32, #tpu.memory_space<vmem>>, %arg9: memref<1x1xbf16, #tpu.memory_space<vmem>>, %arg10: memref<1x1xf32, #tpu.memory_space<vmem>>, %arg11: memref<128x128xbf16, #tpu.memory_space<vmem>>, %arg12: memref<1x128xf32, #tpu.memory_space<vmem>>, %arg13: memref<128x128xbf16, #tpu.memory_space<vmem>>, %arg14: memref<1x128xf32, #tpu.memory_space<vmem>>, %arg15: memref<1x16x128xf32, #tpu.memory_space<vmem>>) attributes {dimension_semantics = [#tpu.dimension_semantics<parallel>], iteration_bounds = array<i64: 2>, scalar_prefetch = 0 : i64, scratch_operands = 0 : i64, tpu.core_type = #tpu.core_type<tc>, window_params = [{transform_indices = @transform_0, window_bounds = array<i64: 1, 16, 128>}, {transform_indices = @transform_1, window_bounds = array<i64: 1, 1, 1>}, {transform_indices = @transform_2, window_bounds = array<i64: 1, 16, 1>}, {transform_indices = @transform_3, window_bounds = array<i64: 1, 1, 16>}, {pipeline_mode = #tpu.pipeline_mode<synchronous>, transform_indices = @transform_4, window_bounds = array<i64: 3, 128, 128>}, {pipeline_mode = #tpu.pipeline_mode<synchronous>, transform_indices = @transform_5, window_bounds = array<i64: 1, 128>}, {pipeline_mode = #tpu.pipeline_mode<synchronous>, transform_indices = @transform_6, window_bounds = array<i64: 128, 384>}, {pipeline_mode = #tpu.pipeline_mode<synchronous>, transform_indices = @transform_7, window_bounds = array<i64: 1, 384>}, {pipeline_mode = #tpu.pipeline_mode<synchronous>, transform_indices = @transform_8, window_bounds = array<i64: 1, 1>}, {pipeline_mode = #tpu.pipeline_mode<synchronous>, transform_indices = @transform_9, window_bounds = array<i64: 1, 1>}, {pipeline_mode = #tpu.pipeline_mode<synchronous>, transform_indices = @transform_10, window_bounds = array<i64: 128, 128>}, {pipeline_mode = #tpu.pipeline_mode<synchronous>, transform_indices = @transform_11, window_bounds = array<i64: 1, 128>}, {pipeline_mode = #tpu.pipeline_mode<synchronous>, transform_indices = @transform_12, window_bounds = array<i64: 128, 128>}, {pipeline_mode = #tpu.pipeline_mode<synchronous>, transform_indices = @transform_13, window_bounds = array<i64: 1, 128>}, {transform_indices = @transform_14, window_bounds = array<i64: 1, 16, 128>}]} {
    %c0 = arith.constant 0 : index
    %c0_0 = arith.constant 0 : index
    %c0_1 = arith.constant 0 : index
    %0 = vector.load %arg1[%c0, %c0_0, %c0_1] : memref<1x16x128xf32, #tpu.memory_space<vmem>>, vector<1x16x128xf32>
    %1 = vector.shape_cast %0 : vector<1x16x128xf32> to vector<16x128xf32>
    %c0_2 = arith.constant 0 : index
    %c0_3 = arith.constant 0 : index
    %c0_4 = arith.constant 0 : index
    %2 = vector.load %arg3[%c0_2, %c0_3, %c0_4] : memref<1x16x1xf32, #tpu.memory_space<vmem>>, vector<1x16x1xf32>
    %3 = vector.shape_cast %2 : vector<1x16x1xf32> to vector<16x1xf32>
    %c0_5 = arith.constant 0 : index
    %c0_6 = arith.constant 0 : index
    %c0_7 = arith.constant 0 : index
    %4 = vector.load %arg4[%c0_5, %c0_6, %c0_7] : memref<1x1x16xf32, #tpu.memory_space<vmem>>, vector<1x1x16xf32>
    %5 = vector.shape_cast %4 : vector<1x1x16xf32> to vector<1x16xf32>
    %6 = tpu.iota {dimensions = array<i32: 0>} : vector<16x1xi32>
    %7 = arith.truncf %1 : vector<16x128xf32> to vector<16x128xbf16>
    %c2_i32 = arith.constant 2 : i32
    %8 = vector.broadcast %c2_i32 : i32 to vector<16x1xi32>
    %9 = arith.cmpi sge, %6, %8 : vector<16x1xi32>
    %c2_i32_8 = arith.constant 2 : i32
    %10 = tpu.dynamic_rotate %1 by %c2_i32_8 dim 0 : vector<16x128xf32>, i32 -> vector<16x128xf32>
    %cst = arith.constant 0.000000e+00 : f32
    %11 = vector.shape_cast %9 : vector<16x1xi1> to vector<16x1xi1>
    %12 = vector.broadcast %11 : vector<16x1xi1> to vector<16x128xi1>
    %13 = vector.broadcast %cst : f32 to vector<16x128xf32>
    %14 = arith.select %12, %10, %13 : vector<16x128xi1>, vector<16x128xf32>
    %c14_i32 = arith.constant 14 : i32
    %15 = vector.broadcast %c14_i32 : i32 to vector<16x1xi32>
    %16 = arith.cmpi slt, %6, %15 : vector<16x1xi32>
    %c14_i32_9 = arith.constant 14 : i32
    %17 = tpu.dynamic_rotate %1 by %c14_i32_9 dim 0 : vector<16x128xf32>, i32 -> vector<16x128xf32>
    %cst_10 = arith.constant 0.000000e+00 : f32
    %18 = vector.shape_cast %16 : vector<16x1xi1> to vector<16x1xi1>
    %19 = vector.broadcast %18 : vector<16x1xi1> to vector<16x128xi1>
    %20 = vector.broadcast %cst_10 : f32 to vector<16x128xf32>
    %21 = arith.select %19, %17, %20 : vector<16x128xi1>, vector<16x128xf32>
    %22 = arith.truncf %14 : vector<16x128xf32> to vector<16x128xbf16>
    %c0_11 = arith.constant 0 : index
    %c0_12 = arith.constant 0 : index
    %c0_13 = arith.constant 0 : index
    %23 = vector.load %arg5[%c0_11, %c0_12, %c0_13] : memref<3x128x128xbf16, #tpu.memory_space<vmem>>, vector<1x128x128xbf16>
    %24 = vector.shape_cast %23 : vector<1x128x128xbf16> to vector<128x128xbf16>
    %cst_14 = arith.constant dense<0.000000e+00> : vector<16x128xf32>
    %25 = tpu.matmul %22, %24, %cst_14 {dimension_numbers = #tpu.dot_dimension_numbers<[1], [0], [0], [1], [0, 0, 1, 1], [], []>} : vector<16x128xbf16>, vector<128x128xbf16>, vector<16x128xf32> -> vector<16x128xf32>
    %c1 = arith.constant 1 : index
    %c0_15 = arith.constant 0 : index
    %c0_16 = arith.constant 0 : index
    %26 = vector.load %arg5[%c1, %c0_15, %c0_16] : memref<3x128x128xbf16, #tpu.memory_space<vmem>>, vector<1x128x128xbf16>
    %27 = vector.shape_cast %26 : vector<1x128x128xbf16> to vector<128x128xbf16>
    %cst_17 = arith.constant dense<0.000000e+00> : vector<16x128xf32>
    %28 = tpu.matmul %7, %27, %cst_17 {dimension_numbers = #tpu.dot_dimension_numbers<[1], [0], [0], [1], [0, 0, 1, 1], [], []>} : vector<16x128xbf16>, vector<128x128xbf16>, vector<16x128xf32> -> vector<16x128xf32>
    %29 = arith.addf %25, %28 : vector<16x128xf32>
    %30 = arith.truncf %21 : vector<16x128xf32> to vector<16x128xbf16>
    %c2 = arith.constant 2 : index
    %c0_18 = arith.constant 0 : index
    %c0_19 = arith.constant 0 : index
    %31 = vector.load %arg5[%c2, %c0_18, %c0_19] : memref<3x128x128xbf16, #tpu.memory_space<vmem>>, vector<1x128x128xbf16>
    %32 = vector.shape_cast %31 : vector<1x128x128xbf16> to vector<128x128xbf16>
    %cst_20 = arith.constant dense<0.000000e+00> : vector<16x128xf32>
    %33 = tpu.matmul %30, %32, %cst_20 {dimension_numbers = #tpu.dot_dimension_numbers<[1], [0], [0], [1], [0, 0, 1, 1], [], []>} : vector<16x128xbf16>, vector<128x128xbf16>, vector<16x128xf32> -> vector<16x128xf32>
    %34 = arith.addf %29, %33 : vector<16x128xf32>
    %c0_21 = arith.constant 0 : index
    %c0_22 = arith.constant 0 : index
    %35 = vector.load %arg6[%c0_21, %c0_22] : memref<1x128xf32, #tpu.memory_space<vmem>>, vector<1x128xf32>
    %36 = vector.broadcast %35 : vector<1x128xf32> to vector<16x128xf32>
    %37 = arith.addf %34, %36 : vector<16x128xf32>
    %cst_23 = arith.constant 0.000000e+00 : f32
    %38 = vector.broadcast %cst_23 : f32 to vector<16x128xf32>
    %39 = arith.maximumf %37, %38 : vector<16x128xf32>
    %cst_24 = arith.constant dense<0.000000e+00> : vector<128xf32>
    %40 = vector.multi_reduction <add>, %39, %cst_24 [0] : vector<16x128xf32> to vector<128xf32>
    %41 = vector.shape_cast %40 : vector<128xf32> to vector<1x128xf32>
    %cst_25 = arith.constant 6.250000e-02 : f32
    %42 = vector.broadcast %cst_25 : f32 to vector<1x128xf32>
    %43 = arith.mulf %41, %42 : vector<1x128xf32>
    %44 = vector.broadcast %43 : vector<1x128xf32> to vector<16x128xf32>
    %45 = arith.subf %39, %44 : vector<16x128xf32>
    %46 = arith.mulf %45, %45 : vector<16x128xf32>
    %cst_26 = arith.constant dense<0.000000e+00> : vector<128xf32>
    %47 = vector.multi_reduction <add>, %46, %cst_26 [0] : vector<16x128xf32> to vector<128xf32>
    %48 = vector.shape_cast %47 : vector<128xf32> to vector<1x128xf32>
    %cst_27 = arith.constant 6.250000e-02 : f32
    %49 = vector.broadcast %cst_27 : f32 to vector<1x128xf32>
    %50 = arith.mulf %48, %49 : vector<1x128xf32>
    %cst_28 = arith.constant 9.99999974E-6 : f32
    %51 = vector.broadcast %cst_28 : f32 to vector<1x128xf32>
    %52 = arith.addf %50, %51 : vector<1x128xf32>
    %53 = math.rsqrt %52 : vector<1x128xf32>
    %54 = vector.broadcast %53 : vector<1x128xf32> to vector<16x128xf32>
    %55 = arith.mulf %45, %54 : vector<16x128xf32>
    %56 = arith.truncf %55 : vector<16x128xf32> to vector<16x128xbf16>
    %c0_29 = arith.constant 0 : index
    %c0_30 = arith.constant 0 : index
    %57 = vector.load %arg7[%c0_29, %c0_30] : memref<128x384xbf16, #tpu.memory_space<vmem>>, vector<128x384xbf16>
    %cst_31 = arith.constant dense<0.000000e+00> : vector<16x384xf32>
    %58 = tpu.matmul %56, %57, %cst_31 {dimension_numbers = #tpu.dot_dimension_numbers<[1], [0], [0], [1], [0, 0, 1, 1], [], []>} : vector<16x128xbf16>, vector<128x384xbf16>, vector<16x384xf32> -> vector<16x384xf32>
    %c0_32 = arith.constant 0 : index
    %c0_33 = arith.constant 0 : index
    %59 = vector.load %arg8[%c0_32, %c0_33] : memref<1x384xf32, #tpu.memory_space<vmem>>, vector<1x384xf32>
    %60 = vector.broadcast %59 : vector<1x384xf32> to vector<16x384xf32>
    %61 = arith.addf %58, %60 : vector<16x384xf32>
    %62 = vector.extract_strided_slice %61 {offsets = [0, 0], sizes = [16, 128], strides = [1, 1]} : vector<16x384xf32> to vector<16x128xf32>
    %63 = arith.truncf %62 : vector<16x128xf32> to vector<16x128xbf16>
    %64 = vector.extract_strided_slice %61 {offsets = [0, 128], sizes = [16, 128], strides = [1, 1]} : vector<16x384xf32> to vector<16x128xf32>
    %65 = arith.truncf %64 : vector<16x128xf32> to vector<16x128xbf16>
    %66 = vector.extract_strided_slice %61 {offsets = [0, 256], sizes = [16, 128], strides = [1, 1]} : vector<16x384xf32> to vector<16x128xf32>
    %67 = vector.broadcast %3 : vector<16x1xf32> to vector<16x128xf32>
    %68 = arith.mulf %66, %67 : vector<16x128xf32>
    %69 = arith.truncf %68 : vector<16x128xf32> to vector<16x128xbf16>
    %cst_34 = arith.constant 9.99999997E-7 : f32
    %70 = vector.broadcast %cst_34 : f32 to vector<1x16xf32>
    %71 = arith.addf %5, %70 : vector<1x16xf32>
    %72 = math.log %71 : vector<1x16xf32>
    %cst_35 = arith.constant dense<0.000000e+00> : vector<16x16xf32>
    %73 = tpu.matmul %63, %65, %cst_35 {dimension_numbers = #tpu.dot_dimension_numbers<[1], [1], [0], [0], [0, 0, 1, 0], [], []>} : vector<16x128xbf16>, vector<16x128xbf16>, vector<16x16xf32> -> vector<16x16xf32>
    %74 = vector.broadcast %72 : vector<1x16xf32> to vector<16x16xf32>
    %75 = arith.addf %73, %74 : vector<16x16xf32>
    %cst_36 = arith.constant dense<0xFF800000> : vector<16xf32>
    %76 = vector.multi_reduction <maximumf>, %75, %cst_36 [1] : vector<16x16xf32> to vector<16xf32>
    %77 = vector.shape_cast %76 : vector<16xf32> to vector<16x1xf32>
    %78 = vector.broadcast %77 : vector<16x1xf32> to vector<16x16xf32>
    %79 = arith.subf %75, %78 : vector<16x16xf32>
    %80 = math.exp %79 : vector<16x16xf32>
    %cst_37 = arith.constant dense<0.000000e+00> : vector<16xf32>
    %81 = vector.multi_reduction <add>, %80, %cst_37 [1] : vector<16x16xf32> to vector<16xf32>
    %82 = vector.shape_cast %81 : vector<16xf32> to vector<16x1xf32>
    %83 = tpu.reciprocal %82 {approx = true} : vector<16x1xf32> -> vector<16x1xf32>
    %84 = arith.truncf %80 : vector<16x16xf32> to vector<16x16xbf16>
    %cst_38 = arith.constant dense<0.000000e+00> : vector<16x128xf32>
    %85 = tpu.matmul %84, %69, %cst_38 {dimension_numbers = #tpu.dot_dimension_numbers<[1], [0], [0], [1], [0, 0, 1, 1], [], []>} : vector<16x16xbf16>, vector<16x128xbf16>, vector<16x128xf32> -> vector<16x128xf32>
    %86 = vector.broadcast %83 : vector<16x1xf32> to vector<16x128xf32>
    %87 = arith.mulf %85, %86 : vector<16x128xf32>
    %cst_39 = arith.constant 0.000000e+00 : f32
    %88 = vector.broadcast %cst_39 : f32 to vector<16x128xf32>
    %89 = arith.maximumf %87, %88 : vector<16x128xf32>
    %90 = arith.truncf %89 : vector<16x128xf32> to vector<16x128xbf16>
    %c0_40 = arith.constant 0 : index
    %c0_41 = arith.constant 0 : index
    %91 = vector.load %arg11[%c0_40, %c0_41] : memref<128x128xbf16, #tpu.memory_space<vmem>>, vector<128x128xbf16>
    %cst_42 = arith.constant dense<0.000000e+00> : vector<16x128xf32>
    %92 = tpu.matmul %90, %91, %cst_42 {dimension_numbers = #tpu.dot_dimension_numbers<[1], [0], [0], [1], [0, 0, 1, 1], [], []>} : vector<16x128xbf16>, vector<128x128xbf16>, vector<16x128xf32> -> vector<16x128xf32>
    %c0_43 = arith.constant 0 : index
    %c0_44 = arith.constant 0 : index
    %93 = vector.load %arg12[%c0_43, %c0_44] : memref<1x128xf32, #tpu.memory_space<vmem>>, vector<1x128xf32>
    %94 = vector.broadcast %93 : vector<1x128xf32> to vector<16x128xf32>
    %95 = arith.addf %92, %94 : vector<16x128xf32>
    %96 = vector.broadcast %3 : vector<16x1xf32> to vector<16x128xf32>
    %97 = arith.mulf %95, %96 : vector<16x128xf32>
    %cst_45 = arith.constant 0.699999988 : f32
    %98 = vector.broadcast %cst_45 : f32 to vector<16x128xf32>
    %99 = arith.mulf %98, %97 : vector<16x128xf32>
    %100 = arith.addf %99, %39 : vector<16x128xf32>
    %101 = arith.truncf %100 : vector<16x128xf32> to vector<16x128xbf16>
    %c0_46 = arith.constant 0 : index
    %c0_47 = arith.constant 0 : index
    %102 = vector.load %arg13[%c0_46, %c0_47] : memref<128x128xbf16, #tpu.memory_space<vmem>>, vector<128x128xbf16>
    %cst_48 = arith.constant dense<0.000000e+00> : vector<16x128xf32>
    %103 = tpu.matmul %101, %102, %cst_48 {dimension_numbers = #tpu.dot_dimension_numbers<[1], [0], [0], [1], [0, 0, 1, 1], [], []>} : vector<16x128xbf16>, vector<128x128xbf16>, vector<16x128xf32> -> vector<16x128xf32>
    %c0_49 = arith.constant 0 : index
    %c0_50 = arith.constant 0 : index
    %104 = vector.load %arg14[%c0_49, %c0_50] : memref<1x128xf32, #tpu.memory_space<vmem>>, vector<1x128xf32>
    %105 = vector.broadcast %104 : vector<1x128xf32> to vector<16x128xf32>
    %106 = arith.addf %103, %105 : vector<16x128xf32>
    %107 = arith.addf %1, %106 : vector<16x128xf32>
    %108 = vector.broadcast %3 : vector<16x1xf32> to vector<16x128xf32>
    %109 = arith.mulf %107, %108 : vector<16x128xf32>
    %c0_51 = arith.constant 0 : index
    %c0_52 = arith.constant 0 : index
    %c0_53 = arith.constant 0 : index
    %110 = vector.load %arg15[%c0_51, %c0_52, %c0_53] : memref<1x16x128xf32, #tpu.memory_space<vmem>>, vector<1x16x128xf32>
    %111 = vector.shape_cast %110 : vector<1x16x128xf32> to vector<16x128xf32>
    %112 = vector.shape_cast %109 : vector<16x128xf32> to vector<1x16x128xf32>
    tpu.vector_store %arg15[%c0_51, %c0_52, %c0_53], %112 {strides = array<i32>} : memref<1x16x128xf32, #tpu.memory_space<vmem>>, vector<1x16x128xf32>,
    return
  }
  func.func @transform_0(%arg0: i32) -> (i32, i32, i32) {
    %c0_i32 = arith.constant 0 : i32
    %c0_i32_0 = arith.constant 0 : i32
    %c0_i32_1 = arith.constant 0 : i32
    return %arg0, %c0_i32, %c0_i32_0 : i32, i32, i32
  }
  func.func @transform_1(%arg0: i32) -> (i32, i32, i32) {
    %c0_i32 = arith.constant 0 : i32
    %c0_i32_0 = arith.constant 0 : i32
    %c0_i32_1 = arith.constant 0 : i32
    return %arg0, %c0_i32, %c0_i32_0 : i32, i32, i32
  }
  func.func @transform_2(%arg0: i32) -> (i32, i32, i32) {
    %c0_i32 = arith.constant 0 : i32
    %c0_i32_0 = arith.constant 0 : i32
    %c0_i32_1 = arith.constant 0 : i32
    return %arg0, %c0_i32, %c0_i32_0 : i32, i32, i32
  }
  func.func @transform_3(%arg0: i32) -> (i32, i32, i32) {
    %c0_i32 = arith.constant 0 : i32
    %c0_i32_0 = arith.constant 0 : i32
    %c0_i32_1 = arith.constant 0 : i32
    return %arg0, %c0_i32, %c0_i32_0 : i32, i32, i32
  }
  func.func @transform_4(%arg0: i32) -> (i32, i32, i32) {
    %c0_i32 = arith.constant 0 : i32
    %c0_i32_0 = arith.constant 0 : i32
    %c0_i32_1 = arith.constant 0 : i32
    %c0_i32_2 = arith.constant 0 : i32
    return %c0_i32, %c0_i32_0, %c0_i32_1 : i32, i32, i32
  }
  func.func @transform_5(%arg0: i32) -> (i32, i32) {
    %c0_i32 = arith.constant 0 : i32
    %c0_i32_0 = arith.constant 0 : i32
    %c0_i32_1 = arith.constant 0 : i32
    return %c0_i32, %c0_i32_0 : i32, i32
  }
  func.func @transform_6(%arg0: i32) -> (i32, i32) {
    %c0_i32 = arith.constant 0 : i32
    %c0_i32_0 = arith.constant 0 : i32
    %c0_i32_1 = arith.constant 0 : i32
    return %c0_i32, %c0_i32_0 : i32, i32
  }
  func.func @transform_7(%arg0: i32) -> (i32, i32) {
    %c0_i32 = arith.constant 0 : i32
    %c0_i32_0 = arith.constant 0 : i32
    %c0_i32_1 = arith.constant 0 : i32
    return %c0_i32, %c0_i32_0 : i32, i32
  }
  func.func @transform_8(%arg0: i32) -> (i32, i32) {
    %c0_i32 = arith.constant 0 : i32
    %c0_i32_0 = arith.constant 0 : i32
    %c0_i32_1 = arith.constant 0 : i32
    return %c0_i32, %c0_i32_0 : i32, i32
  }
  func.func @transform_9(%arg0: i32) -> (i32, i32) {
    %c0_i32 = arith.constant 0 : i32
    %c0_i32_0 = arith.constant 0 : i32
    %c0_i32_1 = arith.constant 0 : i32
    return %c0_i32, %c0_i32_0 : i32, i32
  }
  func.func @transform_10(%arg0: i32) -> (i32, i32) {
    %c0_i32 = arith.constant 0 : i32
    %c0_i32_0 = arith.constant 0 : i32
    %c0_i32_1 = arith.constant 0 : i32
    return %c0_i32, %c0_i32_0 : i32, i32
  }
  func.func @transform_11(%arg0: i32) -> (i32, i32) {
    %c0_i32 = arith.constant 0 : i32
    %c0_i32_0 = arith.constant 0 : i32
    %c0_i32_1 = arith.constant 0 : i32
    return %c0_i32, %c0_i32_0 : i32, i32
  }
  func.func @transform_12(%arg0: i32) -> (i32, i32) {
    %c0_i32 = arith.constant 0 : i32
    %c0_i32_0 = arith.constant 0 : i32
    %c0_i32_1 = arith.constant 0 : i32
    return %c0_i32, %c0_i32_0 : i32, i32
  }
  func.func @transform_13(%arg0: i32) -> (i32, i32) {
    %c0_i32 = arith.constant 0 : i32
    %c0_i32_0 = arith.constant 0 : i32
    %c0_i32_1 = arith.constant 0 : i32
    return %c0_i32, %c0_i32_0 : i32, i32
  }
  func.func @transform_14(%arg0: i32) -> (i32, i32, i32) {
    %c0_i32 = arith.constant 0 : i32
    %c0_i32_0 = arith.constant 0 : i32
    %c0_i32_1 = arith.constant 0 : i32
    return %arg0, %c0_i32, %c0_i32_0 : i32, i32, i32
  }
}

</mosaic_0001>

<bundles_post_ra>
// kernel: tpu_custom_call.1
= control target key start
LH: loop header
LB: loop body
LE: loop exit
PB: predicated region body
PF: predicated region fallthrough
CT: control target
= control target key end

     0   :  { %s2802_s0 = inlined_call_operand.vmem [shape: f32[2,16,128], index: 0, kind: input, shape index: {}]   ;;  %s2803_s1 = inlined_call_operand.vmem [shape: bf16[2,1,1], index: 1, kind: input, shape index: {}]   ;;  %s2804_s2 = inlined_call_operand.vmem [shape: f32[2,16,1], index: 2, kind: input, shape index: {}]   ;;  %s2805_s3 = inlined_call_operand.vmem [shape: f32[2,1,16], index: 3, kind: input, shape index: {}]   ;;  %s2806_s4 = inlined_call_operand.hbm [shape: bf16[3,128,128], index: 4, kind: input, shape index: {}]   ;;  %s2807_s5 = inlined_call_operand.vmem [shape: f32[1,128], index: 5, kind: input, shape index: {}]   ;;  %s2808_s6 = inlined_call_operand.hbm [shape: bf16[128,384], index: 6, kind: input, shape index: {}]   ;;  %s2809_s7 = inlined_call_operand.vmem [shape: f32[1,384], index: 7, kind: input, shape index: {}]   ;;  %s2810_s8 = inlined_call_operand.<no memory space> [shape: bf16[1,1], index: 8, kind: input, shape index: {}]   ;;  %s2811_s10 = inlined_call_operand.hbm [shape: bf16[128,128], index: 10, kind: input, shape index: {}]   ;;  %s2812_s11 = inlined_call_operand.vmem [shape: f32[1,128], index: 11, kind: input, shape index: {}]   ;;  %s2813_s12 = inlined_call_operand.hbm [shape: bf16[128,128], index: 12, kind: input, shape index: {}]   ;;  %s2814_s13 = inlined_call_operand.vmem [shape: f32[1,128], index: 13, kind: input, shape index: {}]   ;;  %s2815_s14 = inlined_call_operand.hbm [shape: f32[2,16,128], index: 14, kind: output, shape index: {}]   ;;  %s2816_s9 = inlined_call_operand.<no memory space> [shape: f32[1,1], index: 9, kind: input, shape index: {}]  }
   0x1   :  { %2818 = sst [smem:[#allocation18_spill]] %s2808_s6 }
   0x2   :  { %23 = vsyncpa [#allocation5], 0 }
   0x3   :  { %24 = vsyncpa [#allocation8], 0 }
   0x4   :  { %25 = vsyncpa [#allocation11], 0 }
   0x5   :  { %26 = vsyncpa [#allocation6], 0 }
   0x6   :  { %28 = vsyncpa [#allocation6 + $0x1], 0  ;;  %s2484_s8 = smov 0   ;;  %s2486_s28 = smov 0  }
   0x7   :  { %s2488_s29 = smov 0   ;;  %s2490_s30 = smov 0  }
   0x8 LB: > { %s2505_s9 = sadd.s32 4294967295, %s2392_s30   ;;  %s1751_s15 = sadd.s32 4294967294, %s2392_s30   ;;  %s2392_s30 = sphi %s2490_s30, %s2838_s30   ;;  %s2388_s29 = sphi %s2488_s29, %s2837_s29   ;;  %s2384_s28 = sphi %s2486_s28, %s2836_s28   ;;  %s2380_s8 = sphi %s2484_s8, %s2835_s8  }
   0x9   : > { %s2509_s1 = sadd.s32 1, %s2392_s30   ;;  %s355_s16 = sadd.s32 1, %s2388_s29 }
   0xa   : > { %s352_s17 = ssub.s32 %s2392_s30, %s2509_s1  ;;  %p365_p0 = scmp.ne.s32.totalorder %s2388_s29, %s2384_s28 }
   0xb   : > { %p353_p1 = scmp.eq.s32.totalorder %s352_s17, 0  ;;  %p366_p2 = scmp.eq.s32.totalorder %s2505_s9, 1 }
   0xc   : > { %p371_p3 = scmp.ne.s32.totalorder %s2384_s28, %s2380_s8  ;;  %p372_p4 = scmp.eq.s32.totalorder %s1751_s15, 1 }
   0xd   : > { %s2520_s18 = scalar_select %p353_p1, %s2388_s29, %s355_s16  }
   0xe   : > { %p2522_p5 = por %p366_p2, %p365_p0  ;;  %p2526_p6 = por %p372_p4, %p371_p3 }
   0xf   : > { %2819 = sst [smem:[#allocation17_spill]] %s2520_s18  ;;  %p1752_p7 = scmp.ge.s32.totalorder %s2392_s30, 1 }
  0x10   : > { %s2821_s20 = scalar_select %p2526_p6, 1, 0 }
  0x11   : > { %p379_p8 = scmp.lt.s32.totalorder %s2392_s30, 3  ;;  %p2817_p9 = scmp.eq.s32.totalorder %s2505_s9, 0 }
  0x12   : > { %s2394_s22 = smov [#allocation7]   ;;  %s2395_s25 = smov [#allocation4]  }
  0x13   : > { %p2533_p10 = pnand %p1752_p7, %p379_p8  ;;  %s407_s23 = sshll.u32 %s2394_s22, 4  ;;  %s408_s23 = int_to_ptr.vmem [resolvable:$true] %s407_s23 }
  0x14   : > { %s391_s26 = sshll.u32 %s2395_s25, 4  ;;  %s2227_s27 = scalar_lea.vmem %s408_s23, 3072  ;;  %s392_s26 = int_to_ptr.vmem [resolvable:$true] %s391_s26 }
  0x15   : > { %p2058_p11 = pneg %p2533_p10  ;;  %p2228_p0 = scmp.ne.s32.totalorder %s408_s23, %s2227_s27 }
  0x16   : > { %p2235_p3 = scmp.lt.s32.totalorder %s408_s23, %s408_s23  ;;  %p2236_p4 = scmp.lt.s32.totalorder %s2227_s27, %s2227_s27 }
  0x17   : > { %p2541_p12 = pnand %p2817_p9, %p2058_p11 }
  0x18   : > { %p2237_p7 = por %p2236_p4, %p2235_p3 }
  0x19   : > { %p2218_p13 = pneg %p2541_p12 }
  0x1b   : > { %p2230_p1 = pnand %p2228_p0, %p2218_p13 }
  0x1d   : > { %p2231_p2 = pneg %p2230_p1 }
  0x1f   : > { %p2238_p8 = pnand %p2237_p7, %p2231_p2 }
  0x21   : > { %2241 = shalt.err (!%p2238_p8)
}
  0x22   : > { %s2396_s15 = smov 192   ;;  %s2397_s16 = smov 12  }
  0x23   : > { %s2824_s6 = sld [smem:[#allocation18_spill]]  ;;  %s2253_s25 = scalar_lea.vmem %s392_s26, 3072 }
  0x24   : > { %p2254_p11 = scmp.ne.s32.totalorder %s392_s26, %s2253_s25  ;;  %p2261_p9 = scmp.lt.s32.totalorder %s392_s26, %s392_s26 }
  0x25   : > { %p2262_p6 = scmp.lt.s32.totalorder %s2253_s25, %s2253_s25 }
  0x26   : > { %p2256_p0 = pnand %p2254_p11, %p2218_p13 }
  0x27   : > { %p2263_p3 = por %p2262_p6, %p2261_p9 }
  0x28   : > { %p2257_p1 = pneg %p2256_p0 }
  0x29   : > { %2064 = dma.hbm_to_vmem [thread:$0]  (!%p2541_p12), %s2824_s6, 3072, %s408_s23, [#allocation8], %s2396_s15, %s2396_s15, %s2397_s16  }
  0x2a   : > { %p2264_p2 = pnand %p2263_p3, %p2257_p1 }
  0x2c   : > { %2267 = shalt.err (!%p2264_p2)
}
  0x2d   : > { %s2398_s27 = smov 64   ;;  %s2399_s18 = smov 4  }
  0x2e   : > { %2061 = dma.hbm_to_vmem [thread:$0]  (!%p2541_p12), %s2806_s4, 3072, %s392_s26, [#allocation5], %s2398_s27, %s2398_s27, %s2399_s18  }
  0x2f   : > { %s2400_s16 = smov [#allocation9]   ;;  %s2401_s22 = smov [#allocation10]  }
  0x30   : > { %s429_s17 = sshll.u32 %s2400_s16, 4  ;;  %s445_s6 = sshll.u32 %s2401_s22, 4  ;;  %s430_s17 = int_to_ptr.vmem [resolvable:$true] %s429_s17  ;;  %s446_s6 = int_to_ptr.vmem [resolvable:$true] %s445_s6 }
  0x31   : > { %s2279_s25 = scalar_lea.vmem %s430_s17, 1024  ;;  %p2287_p7 = scmp.lt.s32.totalorder %s430_s17, %s430_s17 }
  0x32   : > { %p2280_p6 = scmp.ne.s32.totalorder %s430_s17, %s2279_s25  ;;  %p2288_p8 = scmp.lt.s32.totalorder %s2279_s25, %s2279_s25 }
  0x34   : > { %p2282_p9 = pnand %p2280_p6, %p2218_p13  ;;  %p2289_p11 = por %p2288_p8, %p2287_p7 }
  0x36   : > { %p2283_p4 = pneg %p2282_p9 }
  0x38   : > { %p2290_p0 = pnand %p2289_p11, %p2283_p4 }
  0x3a   : > { %2293 = shalt.err (!%p2290_p0)
}
  0x3b   : > { %2067 = dma.hbm_to_vmem [thread:$0]  (!%p2541_p12), %s2811_s10, 1024, %s430_s17, [#allocation8], %s2398_s27, %s2398_s27, %s2399_s18  }
  0x3c   : > { %s2305_s15 = scalar_lea.vmem %s446_s6, 1024  ;;  %p2313_p6 = scmp.lt.s32.totalorder %s446_s6, %s446_s6 }
  0x3d   : > { %p2306_p1 = scmp.ne.s32.totalorder %s446_s6, %s2305_s15  ;;  %p2314_p9 = scmp.lt.s32.totalorder %s2305_s15, %s2305_s15 }
  0x3f   : > { %p2308_p3 = pnand %p2306_p1, %p2218_p13  ;;  %p2315_p4 = por %p2314_p9, %p2313_p6 }
  0x41   : > { %p2309_p2 = pneg %p2308_p3 }
  0x43   : > { %p2316_p7 = pnand %p2315_p4, %p2309_p2 }
  0x45   : > { %2319 = shalt.err (!%p2316_p7)
}
  0x46   : > { %2070 = dma.hbm_to_vmem [thread:$0]  (!%p2541_p12), %s2813_s12, 1024, %s446_s6, [#allocation11], %s2398_s27, %s2398_s27, %s2399_s18  }
  0x47   : > { %492 = sbr.rel (%p2533_p10) target bundleno = 1604 (0x644), region = 76  ;;  %p2825_p13 = scmp.eq.s32.totalorder (!%p2533_p10), %s2505_s9, 0 }
  0x4c   : > { %2363 = dma.done.wait (%p2825_p13), [#allocation5], 3072   ;;  %p2826_p8 = pmov %p2825_p13 }
  0x4e   : > { %2365 = vsyncadd (%p2826_p8), [#allocation5], 4294964224  ;;  %p2827_p11 = pmov %p2826_p8 }
  0x4f   : > { %p2828_p0 = pmov %p2826_p8 }
  0x50   : > { %2367 = dma.done.wait (%p2827_p11), [#allocation8], 4096  }
  0x51   : > { %2369 = vsyncadd (%p2828_p0), [#allocation8], 4294963200  ;;  %p2829_p1 = pmov %p2828_p0 }
  0x52   : > { %p2830_p12 = pmov %p2828_p0 }
  0x53   : > { %2371 = dma.done.wait (%p2829_p1), [#allocation11], 1024  }
  0x54   : > { %2373 = vsyncadd (%p2830_p12), [#allocation11], 4294966272  ;;  %v2402_v0 = vmov 0.0   ;;  %vm2403_vm0 = vmmov 0   ;;  %v2132_v1 = vld [vmem:[#allocation4 + $0x78] sm:$0xff]   ;;  %v2134_v3 = vld [vmem:[#allocation4 + $0x70] sm:$0xff]   ;;  %v583_v10 = vlaneseq }
  0x55   : > { %1908 = vmatprep.subr.bf16.mxu0 %v2402_v0  ;;  %1928 = vmatprep.subr.bf16.mxu1 %v2402_v0  ;;  %v2133_v2 = vld [vmem:[#allocation4 + $0x38] sm:$0xff]   ;;  %v2135_v4 = vld [vmem:[#allocation4 + $0x30] sm:$0xff]   ;;  %p561_p10 = scmp.lt.s32.totalorder %s2505_s9, 1  ;;  %v2136_v5 = vld [vmem:[#allocation4 + $0x68] sm:$0xff]   ;;  %vm2404_vm2 = vmmov 1   ;;  %v2405_v61 = vmov 0  }
  0x56   : > { %1924 = vmatprep.mubr.msk.bf16.mxu0 %vm2403_vm0, %v2402_v0  ;;  %1944 = vmatprep.mubr.msk.bf16.mxu1 %vm2403_vm0, %v2402_v0  ;;  %v2137_v6 = vld [vmem:[#allocation4 + $0x28] sm:$0xff]   ;;  %v2138_v7 = vld [vmem:[#allocation4 + $0x60] sm:$0xff]   ;;  %v2140_v9 = vld [vmem:[#allocation4 + $0x58] sm:$0xff]   ;;  %v2628_v15 = vshrl.u32 %v583_v10, 7  ;;  %vm1296_vm8 = vcmask 130048   ;;  %s558_s17 = sand.u32 1, %s2384_s28  }
  0x57   : > { %1909 = vmatpush3.bf16.msra.mxu0 %v2132_v1  ;;  %1929 = vmatpush3.bf16.msra.mxu1 %v2133_v2  ;;  %s2614_s6 = scalar_select %p561_p10, %s2505_s9, 1  ;;  %v2139_v8 = vld [vmem:[#allocation4 + $0x20] sm:$0xff]   ;;  %v2141_v11 = vld [vmem:[#allocation4 + $0x18] sm:$0xff]   ;;  %v2142_v12 = vld [vmem:[#allocation4 + $0x50] sm:$0xff]  }
  0x58   : > { %1910 = vmatprep.subr.bf16.mxu0 %v2402_v0  ;;  %1930 = vmatprep.subr.bf16.mxu1 %v2402_v0  ;;  %v2143_v13 = vld [vmem:[#allocation4 + $0x10] sm:$0xff]   ;;  %vm587_vm1 = vcmp.ge.s32.totalorder %v2628_v15, 2  ;;  %v2144_v17 = vld [vmem:[#allocation4 + $0x48] sm:$0xff]   ;;  %v2146_v22 = vld [vmem:[#allocation4 + $0x40] sm:$0xff]   ;;  %vm591_vm4 = vcmp.lt.s32.totalorder %v2628_v15, 2  ;;  %v585_v37 = vadd.s32 8, %v2628_v15 }
  0x59   : > { %s1847_s18 = sshll.u32 %s2614_s6, 4  ;;  %v2145_v18 = vld [vmem:[#allocation4 + $0x8] sm:$0xff]   ;;  %vm2639_vm3 = vmpackc.low %vm2404_vm2, %vm587_vm1  ;;  %v2147_v23 = vld [vmem:[#allocation4] sm:$0xff]   ;;  %vm604_vm5 = vcmp.lt.s32.totalorder %v2628_v15, 6  ;;  %2130 = vset.pattern.permute.xlu1 %v2405_v61  ;;  %2131 = vset.pattern.permute.xlu0 %v2405_v61  ;;  %s576_s24 = scalar_lea.vmem %s2805_s3, %s2614_s6 }
  0x5a   : > { %s565_s27 = scalar_lea.vmem %s2802_s0, %s1847_s18  ;;  %v2148_v26 = vld [vmem:[#allocation4 + $0xb8] sm:$0xff]   ;;  %v2149_v29 = vld [vmem:[#allocation4 + $0xb0] sm:$0xff]   ;;  %v2150_v30 = vld [vmem:[#allocation4 + $0xa8] sm:$0xff]   ;;  %vm601_vm6 = vcmp.lt.s32.totalorder %v585_v37, 14  ;;  %s573_s26 = scalar_lea.vmem %s2804_s2, %s1847_s18 }
  0x5b   : > { %1911 = vmatpush3.bf16.msra.mxu0 %v2134_v3  ;;  %1931 = vmatpush3.bf16.msra.mxu1 %v2135_v4  ;;  %v2626_v14 = vld [vmem:[%s565_s27] sm:$0xff]  ;;  %v2632_v16 = vld [vmem:[%s565_s27 + $0x8] sm:$0xff]  ;;  %v2152_v32 = vld [vmem:[#allocation4 + $0x98] sm:$0xff]   ;;  %s1763_s23 = sshll.u32 %s558_s17, 4  ;;  %s1849_s22 = sshll.u32 %s2505_s9, 8 }
  0x5c   : > { %1912 = vmatprep.subr.bf16.mxu0 %v2402_v0  ;;  %1932 = vmatprep.subr.bf16.mxu1 %v2402_v0  ;;  %v589_v19 = vrot.slane %v2626_v14, 6  ;;  %v590_v20 = vrot.slane %v2632_v16, 6  ;;  %v586_v27 = vpack.c.bf16 %v2632_v16, %v2626_v14  ;;  %v2151_v31 = vld [vmem:[#allocation4 + $0xa0] sm:$0xff]   ;;  %v2153_v33 = vld [vmem:[#allocation4 + $0x90] sm:$0xff]   ;;  %v602_v34 = vrot.slane %v2626_v14, 2  ;;  %v2154_v36 = vld [vmem:[#allocation4 + $0x88] sm:$0xff]  }
  0x5d   : > { %v603_v35 = vrot.slane %v2632_v16, 2  ;;  %v2155_v38 = vld [vmem:[#allocation4 + $0x80] sm:$0xff]   ;;  %vm1795_vm7 = vmpackc.low %vm601_vm6, %vm2404_vm2  ;;  %v2158_v42 = vld [vmem:[#allocation7 + $0xac] ss:$12 sps:$4 sm:$0xff]   ;;  %s560_s15 = scalar_lea.vmem [#allocation12], %s1763_s23  ;;  %s2762_s6 = scalar_lea.sflag [#allocation6], %s558_s17 }
  0x5e   : > { %v592_v24 = vsel %vm591_vm4, %v589_v19, %v590_v20  ;;  %v593_v25 = vsel %vm591_vm4, %v590_v20, %v589_v19  ;;  %v2156_v43 = vld [vmem:[#allocation7 + $0xa8] ss:$12 sps:$4 sm:$0xff]   ;;  %v2159_v44 = vld [vmem:[#allocation7 + $0xb0] ss:$12 sps:$4 sm:$0xff]   ;;  %v2163_v47 = vld [vmem:[#allocation7 + $0x98] ss:$12 sps:$4 sm:$0xff]  }
  0x5f   : > { %1913 = vmatpush3.bf16.msra.mxu0 %v2136_v5  ;;  %1933 = vmatpush3.bf16.msra.mxu1 %v2137_v6  ;;  %v1785_v28 = vpack.c.bf16 %v592_v24, %v593_v25  ;;  %v605_v39 = vsel %vm604_vm5, %v602_v34, %v603_v35  ;;  %v606_v40 = vsel %vm604_vm5, %v603_v35, %v602_v34  ;;  %v2162_v45 = vld [vmem:[#allocation7 + $0x94] ss:$12 sps:$4 sm:$0xff]   ;;  %v2160_v46 = vld [vmem:[#allocation7 + $0x90] ss:$12 sps:$4 sm:$0xff]   ;;  %v2164_v49 = vld [vmem:[#allocation7 + $0x78] ss:$12 sps:$4 sm:$0xff]  }
  0x60   : > { %1914 = vmatprep.subr.bf16.mxu0 %v2402_v0  ;;  %1934 = vmatprep.subr.bf16.mxu1 %v2402_v0  ;;  %v1796_v41 = vpack.c.bf16 %v606_v40, %v605_v39  ;;  %v2166_v48 = vld [vmem:[#allocation7 + $0x7c] ss:$12 sps:$4 sm:$0xff]   ;;  %v2167_v50 = vld [vmem:[#allocation7 + $0x80] ss:$12 sps:$4 sm:$0xff]   ;;  %v2170_v51 = vld [vmem:[#allocation7 + $0x64] ss:$12 sps:$4 sm:$0xff]  }
  0x61   : > { %v2168_v52 = vld [vmem:[#allocation7 + $0x60] ss:$12 sps:$4 sm:$0xff]   ;;  %v2171_v53 = vld [vmem:[#allocation7 + $0x68] ss:$12 sps:$4 sm:$0xff]   ;;  %v2175_v56 = vld [vmem:[#allocation7 + $0x50] ss:$12 sps:$4 sm:$0xff]  }
  0x62   : > { %v2172_v54 = vld [vmem:[#allocation7 + $0x48] ss:$12 sps:$4 sm:$0xff]   ;;  %v2174_v55 = vld [vmem:[#allocation7 + $0x4c] ss:$12 sps:$4 sm:$0xff]   ;;  %v2176_v58 = vld [vmem:[#allocation7 + $0x30] ss:$12 sps:$4 sm:$0xff]  }
  0x63   : > { %1915 = vmatpush3.bf16.msra.mxu0 %v2138_v7  ;;  %1935 = vmatpush3.bf16.msra.mxu1 %v2139_v8  ;;  %v2178_v57 = vld [vmem:[#allocation7 + $0x34] ss:$12 sps:$4 sm:$0xff]   ;;  %v2179_v59 = vld [vmem:[#allocation7 + $0x38] ss:$12 sps:$4 sm:$0xff]   ;;  %v2182_v60 = vld [vmem:[#allocation7 + $0x1c] ss:$12 sps:$4 sm:$0xff]  }
  0x64   : > { %1916 = vmatprep.subr.bf16.mxu0 %v2402_v0  ;;  %1936 = vmatprep.subr.bf16.mxu1 %v2402_v0  ;;  %v2180_v62 = vld [vmem:[#allocation7 + $0x18] ss:$12 sps:$4 sm:$0xff]   ;;  %v2183_v63 = vld [vmem:[#allocation7 + $0x20] ss:$12 sps:$4 sm:$0xff]   ;;  %v2187_v3 = vld [vmem:[#allocation7 + $0x8] ss:$12 sps:$4 sm:$0xff]  }
  0x65   : > { %v2186_v1 = vld [vmem:[#allocation7 + $0x4] ss:$12 sps:$4 sm:$0xff]   ;;  %v2184_v2 = vld [vmem:[#allocation7] ss:$12 sps:$4 sm:$0xff]   ;;  %s1618_s16 = sshll.u32 %s560_s15, 4  ;;  %s2406_s9 = smov [#allocation12]   ;;  %s2754_s16 = int_to_ptr.vmem [resolvable:$true] %s1618_s16 }
  0x66   : > { %v580_v4 = vld [vmem:[%s573_s26] sm:$0xff]  ;;  %v581_v5 = vld [vmem:[%s573_s26 + $0x8] sm:$0xff]  ;;  %s2320_s27 = scalar_lea.vmem %s2754_s16, 256  ;;  %s2324_s25 = sshll.u32 %s2406_s9, 4  ;;  %s2325_s25 = int_to_ptr.vmem [resolvable:$false] %s2324_s25 }
  0x67   : > { %1917 = vmatpush3.bf16.msra.mxu0 %v2140_v9  ;;  %1937 = vmatpush3.bf16.msra.mxu1 %v2141_v11  ;;  %v1798_v20 = vld [vmem:[%s2807_s5] ss:$0 sm:$0xff]  ;;  %p2321_p3 = scmp.ne.s32.totalorder %s2754_s16, %s2320_s27  ;;  %s2326_s26 = scalar_lea.vmem %s2325_s25, 512 }
  0x68   : > { %1918 = vmatprep.subr.bf16.mxu0 %v2402_v0  ;;  %1938 = vmatprep.subr.bf16.mxu1 %v2402_v0  ;;  %p2327_p9 = scmp.lt.s32.totalorder %s2754_s16, %s2325_s25  ;;  %p2328_p4 = scmp.lt.s32.totalorder %s2326_s26, %s2320_s27 }
  0x69   : > { %1235 = vperm.xlu1 %2130, %v580_v4   ;;  %p2322_p2 = pnand %p2321_p3, %p2522_p5 }
  0x6a   : > { %p2329_p7 = por %p2328_p4, %p2327_p9 }
  0x6b   : > { %1919 = vmatpush3.bf16.msra.mxu0 %v2142_v12  ;;  %1939 = vmatpush3.bf16.msra.mxu1 %v2143_v13  ;;  %p2323_p6 = pneg %p2322_p2 }
  0x6c   : > { %1920 = vmatprep.subr.bf16.mxu0 %v2402_v0  ;;  %1940 = vmatprep.subr.bf16.mxu1 %v2402_v0 }
  0x6d   : > { %1240 = vperm.xlu1 %2130, %v581_v5   ;;  %p2330_p13 = pnand %p2329_p7, %p2323_p6 }
  0x6f   : > { %1921 = vmatpush3.bf16.msra.mxu0 %v2144_v17  ;;  %1941 = vmatpush3.bf16.msra.mxu1 %v2145_v18 }
  0x70   : > { %1922 = vmatprep.subr.bf16.mxu0 %v2402_v0  ;;  %1942 = vmatprep.subr.bf16.mxu1 %v2402_v0 }
  0x73   : > { %1923 = vmatpush3.bf16.msra.mxu0 %v2146_v22  ;;  %1943 = vmatpush3.bf16.msra.mxu1 %v2147_v23 }
  0x74   : > { %1948 = vmatprep.subr.bf16.mxu0 %v2402_v0  ;;  %1147 = vmatprep.subr.bf16.mxu1 %v2158_v42 }
  0x76   : > { %1925 = vmatmul.mubr.bf16.vlgmr.msra.gmra.mxu0 %v586_v27  ;;  %1945 = vmatmul.mubr.msk.bf16.vlgmr.msra.gmra.mxu1 %vm2639_vm3, %v1785_v28 }
  0x77   : > { %1949 = vmatpush3.bf16.msra.mxu0 %v2148_v26  ;;  %1964 = vmatprep.mubr.msk.bf16.mxu0 %vm2403_vm0, %v2402_v0 }
  0x78   : > { %1950 = vmatprep.subr.bf16.mxu0 %v2402_v0  ;;  %1148 = vmatpush1.bf16.msra.mxu1 %v2156_v43 }
  0x79   : > { %1149 = vmatprep.subr.bf16.mxu1 %v2162_v45  ;;  %1179 = vmatprep.mubr.bf16.mxu1 %v2405_v61  ;;  %v1014_v61 = vsub.s32 2, %v2628_v15 }
  0x7b   : > { %1951 = vmatpush3.bf16.msra.mxu0 %v2149_v29 }
  0x7c   : > { %1952 = vmatprep.subr.bf16.mxu0 %v2402_v0  ;;  %1150 = vmatpush1.bf16.msra.mxu1 %v2160_v46 }
  0x7d   : > { %1151 = vmatprep.subr.bf16.mxu1 %v2166_v48 }
  0x7f   : > { %1953 = vmatpush3.bf16.msra.mxu0 %v2150_v30 }
  0x80   : > { %1954 = vmatprep.subr.bf16.mxu0 %v2402_v0  ;;  %1152 = vmatpush1.bf16.msra.mxu1 %v2164_v49 }
  0x81   : > { %1153 = vmatprep.subr.bf16.mxu1 %v2170_v51 }
  0x83   : > { %1955 = vmatpush3.bf16.msra.mxu0 %v2151_v31 }
  0x84   : > { %1956 = vmatprep.subr.bf16.mxu0 %v2402_v0  ;;  %1154 = vmatpush1.bf16.msra.mxu1 %v2168_v52 }
  0x85   : > { %1155 = vmatprep.subr.bf16.mxu1 %v2174_v55  ;;  %v1010_v55 = vsub.s32 1, %v2628_v15 }
  0x87   : > { %1957 = vmatpush3.bf16.msra.mxu0 %v2152_v32 }
  0x88   : > { %1958 = vmatprep.subr.bf16.mxu0 %v2402_v0  ;;  %1156 = vmatpush1.bf16.msra.mxu1 %v2172_v54 }
  0x89   : > { %1157 = vmatprep.subr.bf16.mxu1 %v2178_v57 }
  0x8b   : > { %1959 = vmatpush3.bf16.msra.mxu0 %v2153_v33 }
  0x8c   : > { %1960 = vmatprep.subr.bf16.mxu0 %v2402_v0  ;;  %1158 = vmatpush1.bf16.msra.mxu1 %v2176_v58  ;;  %v1002_v58 = vld [vmem:[%s2809_s7] sm:$0x7] }
  0x8d   : > { %1159 = vmatprep.subr.bf16.mxu1 %v2182_v60 }
  0x8f   : > { %1961 = vmatpush3.bf16.msra.mxu0 %v2154_v36 }
  0x90   : > { %1962 = vmatprep.subr.bf16.mxu0 %v2402_v0  ;;  %1160 = vmatpush1.bf16.msra.mxu1 %v2180_v62 }
  0x91   : > { %1161 = vmatprep.subr.bf16.mxu1 %v2186_v1 }
  0x93   : > { %1963 = vmatpush3.bf16.msra.mxu0 %v2155_v38 }
  0x94   : > { %1968 = vmatprep.subr.bf16.mxu0 %v2402_v0  ;;  %1162 = vmatpush1.bf16.msra.mxu1 %v2184_v2 }
  0x95   : > { %1988 = vmatprep.subr.bf16.mxu1 %v2402_v0 }
  0x96   : > { %1965 = vmatmul.mubr.msk.bf16.vlgmr.msra.gmra.mxu0 %vm1795_vm7, %v1796_v41 }
  0x97   : > { %1984 = vmatprep.mubr.msk.bf16.mxu0 %vm2403_vm0, %v2402_v0  ;;  %1969 = vmatpush3.bf16.msra.mxu0 %v2159_v44 }
  0x98   : > { %1970 = vmatprep.subr.bf16.mxu0 %v2402_v0 }
  0x9b   : > { %1971 = vmatpush3.bf16.msra.mxu0 %v2163_v47 }
  0x9c   : > { %1972 = vmatprep.subr.bf16.mxu0 %v2402_v0 }
  0x9f   : > { %1973 = vmatpush3.bf16.msra.mxu0 %v2167_v50 }
  0xa0   : > { %1974 = vmatprep.subr.bf16.mxu0 %v2402_v0 }
  0xa3   : > { %1975 = vmatpush3.bf16.msra.mxu0 %v2171_v53 }
  0xa4   : > { %1976 = vmatprep.subr.bf16.mxu0 %v2402_v0 }
  0xa7   : > { %1977 = vmatpush3.bf16.msra.mxu0 %v2175_v56 }
  0xa8   : > { %1978 = vmatprep.subr.bf16.mxu0 %v2402_v0 }
  0xab   : > { %1979 = vmatpush3.bf16.msra.mxu0 %v2179_v59 }
  0xac   : > { %1980 = vmatprep.subr.bf16.mxu0 %v2402_v0 }
  0xaf   : > { %1981 = vmatpush3.bf16.msra.mxu0 %v2183_v63  ;;  %v1011_v63 = vrot.slane %v1002_v58, %v1010_v55  ;;  %v2195_v55 = vld [vmem:[#allocation9] sm:$0xff]  }
  0xb0   : > { %1982 = vmatprep.subr.bf16.mxu0 %v2402_v0 }
  0xb3   : > { %1983 = vmatpush3.bf16.msra.mxu0 %v2187_v3  ;;  %v1006_v3 = vsub.s32 0, %v2628_v15 }
  0xb4   : > { %2020 = vmatprep.subr.bf16.mxu0 %v2402_v0 }
  0xe4   : > { %v2703_v62 = vpop.permute.xlu1 %1235 }
 0x136   : > { %v729_v6 = vpop.f32.mrf.mxu0  ;;  %v818_v7 = vpop.f32.mrf.mxu1 }
 0x137   : > { %v819_v17 = vadd.f32 %v818_v7, %v729_v6  ;;  %v1015_v6 = vrot.slane %v1002_v58, %v1014_v61 }
 0x138   : > { %v1926_v8 = vpop.f32.mrf.mxu0  ;;  %v1946_v9 = vpop.f32.mrf.mxu1 }
 0x13a   : > { %v732_v10 = vpop.f32.mrf.mxu0  ;;  %v821_v11 = vpop.f32.mrf.mxu1 }
 0x13b   : > { %v822_v22 = vadd.f32 %v821_v11, %v732_v10  ;;  %v1007_v11 = vrot.slane %v1002_v58, %v1006_v3  ;;  %v2198_v58 = vld [vmem:[#allocation10 + $0x28] sm:$0xff]  }
 0x13c   : > { %v1927_v12 = vpop.f32.mrf.mxu0  ;;  %v1947_v13 = vpop.f32.mrf.mxu1 }
 0x13d   : > { %v2706_v12 = vpop.permute.xlu1 %1240 }
 0x156   : > { %v925_v18 = vpop.f32.mrf.mxu0 }
 0x157   : > { %v932_v19 = vadd.f32 %v925_v18, %v819_v17 }
 0x158   : > { %v1966_v21 = vpop.f32.mrf.mxu0 }
 0x159   : > { %v941_v24 = vadd.f32 %v1798_v20, %v932_v19 }
 0x15a   : > { %v928_v23 = vpop.f32.mrf.mxu0 }
 0x15b   : > { %v933_v25 = vadd.f32 %v928_v23, %v822_v22  ;;  %v2686_v28 = vmax.f32 %v941_v24, 0.0  ;;  %v582_v22 = vld [vmem:[%s576_s24] sm:$0x1]  ;;  %s2760_s24 = scalar_lea.hbm %s2815_s14, %s1849_s22 }
 0x15c   : > { %v1967_v26 = vpop.f32.mrf.mxu0  ;;  %v1246_v23 = vadd.f32 1e-06, %v582_v22 }
 0x15d   : > { %v942_v27 = vadd.f32 %v1798_v20, %v933_v25 }
 0x15f   : > { %v2688_v29 = vmax.f32 %v942_v27, 0.0 }
 0x161   : > { %v945_v30 = vadd.f32 %v2688_v29, %v2686_v28 }
 0x163   : > { %v946_v31 = vrot.slane %v945_v30, 4 }
 0x165   : > { %v947_v32 = vadd.f32 %v946_v31, %v945_v30 }
 0x167   : > { %v948_v33 = vrot.slane %v947_v32, 2 }
 0x169   : > { %v949_v34 = vadd.f32 %v948_v33, %v947_v32 }
 0x16b   : > { %v950_v35 = vrot.slane %v949_v34, 1 }
 0x16d   : > { %v951_v36 = vadd.f32 %v950_v35, %v949_v34 }
 0x16f   : > { %v952_v37 = vmul.f32 0.0625, %v951_v36 }
 0x171   : > { %v953_v38 = vsub.f32 %v2686_v28, %v952_v37  ;;  %v954_v39 = vsub.f32 %v2688_v29, %v952_v37 }
 0x173   : > { %v955_v40 = vmul.f32 %v953_v38, %v953_v38  ;;  %v956_v41 = vmul.f32 %v954_v39, %v954_v39 }
 0x175   : > { %v957_v42 = vadd.f32 %v956_v41, %v955_v40 }
 0x177   : > { %v958_v43 = vrot.slane %v957_v42, 4 }
 0x179   : > { %v959_v44 = vadd.f32 %v958_v43, %v957_v42 }
 0x17b   : > { %v960_v45 = vrot.slane %v959_v44, 2 }
 0x17d   : > { %v961_v46 = vadd.f32 %v960_v45, %v959_v44 }
 0x17f   : > { %v962_v47 = vrot.slane %v961_v46, 1 }
 0x181   : > { %v963_v48 = vadd.f32 %v962_v47, %v961_v46 }
 0x183   : > { %v964_v49 = vmul.f32 0.0625, %v963_v48  ;;  %v2188_v48 = vld [vmem:[#allocation9 + $0x38] sm:$0xff]  }
 0x185   : > { %v965_v50 = vadd.f32 1e-05, %v964_v49  ;;  %v2189_v49 = vld [vmem:[#allocation9 + $0x30] sm:$0xff]  }
 0x187   : > { %2204 = vrsqrt.f32 %v965_v50  ;;  %v2190_v50 = vld [vmem:[#allocation9 + $0x28] sm:$0xff]  }
 0x188   : > { %2206 = vlog2.f32 %v1246_v23 }
 0x194   : > { %v2205_v51 = vpop.eup %2204 }
 0x195   : > { %v967_v52 = vmul.f32 %v2205_v51, %v953_v38  ;;  %v968_v53 = vmul.f32 %v2205_v51, %v954_v39  ;;  %v2207_v24 = vpop.eup %2206  ;;  %v2191_v51 = vld [vmem:[#allocation9 + $0x20] sm:$0xff]  }
 0x196   : > { %v1248_v25 = vmul.f32 0.6931472, %v2207_v24 }
 0x197   : > { %v969_v54 = vpack.c.bf16 %v968_v53, %v967_v52  ;;  %v2192_v52 = vld [vmem:[#allocation9 + $0x18] sm:$0xff]   ;;  %v2193_v53 = vld [vmem:[#allocation9 + $0x10] sm:$0xff]  }
 0x198   : > { %v1253_v26 = vrot.slane %v1248_v25, %v1006_v3 }
 0x199   : > { %1180 = vmatmul.mubr.bf16.vlgmr.msra.gmra.mxu1 %v969_v54  ;;  %1985 = vmatmul.mubr.bf16.vlgmr.msra.gmra.mxu0 %v969_v54  ;;  %v2194_v54 = vld [vmem:[#allocation9 + $0x8] sm:$0xff]  }
 0x19a   : > { %1990 = vmatprep.mubr.msk.bf16.mxu1 %vm2403_vm0, %v2402_v0  ;;  %2036 = vmatprep.mubr.msk.bf16.mxu0 %vm2403_vm0, %v2402_v0 }
 0x259   : > { %v1181_v56 = vpop.f32.mrf.mxu1  ;;  %v1224_v57 = vpop.f32.mrf.mxu0 }
 0x25a   : > { %v1225_v13 = vadd.f32 %v1224_v57, %v1015_v6  ;;  %v1182_v19 = vadd.f32 %v1181_v56, %v1007_v11  ;;  %v2196_v56 = vld [vmem:[#allocation10 + $0x38] sm:$0xff]   ;;  %v2197_v57 = vld [vmem:[#allocation10 + $0x30] sm:$0xff]  }
 0x25b   : > { %v1183_v59 = vpop.f32.mrf.mxu1  ;;  %v1986_v60 = vpop.f32.mrf.mxu0  ;;  %2021 = vmatpush3.bf16.msra.mxu0 %v2196_v56 }
 0x25c   : > { %v1184_v7 = vadd.f32 %v1183_v59, %v1011_v63  ;;  %v1243_v15 = vmul.f32 %v2703_v62, %v1225_v13  ;;  %2022 = vmatprep.subr.bf16.mxu0 %v2402_v0  ;;  %v2199_v59 = vld [vmem:[#allocation10 + $0x20] sm:$0xff]   ;;  %v2201_v13 = vld [vmem:[#allocation10 + $0x10] sm:$0xff]  }
 0x25d   : > { %v1185_v1 = vpop.f32.mrf.mxu1  ;;  %v1227_v2 = vpop.f32.mrf.mxu0 }
 0x25e   : > { %v1228_v9 = vadd.f32 %v1227_v2, %v1015_v6  ;;  %v1186_v17 = vadd.f32 %v1185_v1, %v1007_v11  ;;  %v2200_v11 = vld [vmem:[#allocation10 + $0x18] sm:$0xff]  }
 0x25f   : > { %v1187_v4 = vpop.f32.mrf.mxu1  ;;  %v1987_v5 = vpop.f32.mrf.mxu0  ;;  %2023 = vmatpush3.bf16.msra.mxu0 %v2197_v57 }
 0x260   : > { %v1188_v8 = vadd.f32 %v1187_v4, %v1011_v63  ;;  %v1244_v18 = vmul.f32 %v2706_v12, %v1228_v9  ;;  %v1231_v20 = vpack.c.bf16 %v1186_v17, %v1182_v19  ;;  %2024 = vmatprep.subr.bf16.mxu0 %v2402_v0  ;;  %v2202_v17 = vld [vmem:[#allocation10 + $0x8] sm:$0xff]   ;;  %v1824_v19 = vld [vmem:[%s2812_s11] ss:$0 sm:$0xff] }
 0x262   : > { %v1232_v10 = vpack.c.bf16 %v1188_v8, %v1184_v7  ;;  %v1245_v21 = vpack.c.bf16 %v1244_v18, %v1243_v15  ;;  %v2203_v18 = vld [vmem:[#allocation10] sm:$0xff]  }
 0x263   : > { %2025 = vmatpush3.bf16.msra.mxu0 %v2198_v58 }
 0x264   : > { %1989 = vmatpush3.bf16.xpose.msra.mxu1 %v1232_v10  ;;  %2026 = vmatprep.subr.bf16.mxu0 %v2402_v0 }
 0x265   : > { %1994 = vmatprep.subr.bf16.mxu1 %v2402_v0 }
 0x267   : > { %2027 = vmatpush3.bf16.msra.mxu0 %v2199_v59 }
 0x268   : > { %2028 = vmatprep.subr.bf16.mxu0 %v2402_v0 }
 0x26b   : > { %1991 = vmatmul.mubr.bf16.vlgmr.msra.gmra.mxu1 %v1231_v20  ;;  %2029 = vmatpush3.bf16.msra.mxu0 %v2200_v11 }
 0x26c   : > { %1995 = vmatpush3.bf16.msra.mxu1 %v1245_v21  ;;  %1996 = vmatprep.mubr.msk.bf16.mxu1 %vm2403_vm0, %v2402_v0 }
 0x26d   : > { %2000 = vmatprep.subr.bf16.mxu1 %v2402_v0  ;;  %2030 = vmatprep.subr.bf16.mxu0 %v2402_v0 }
 0x26f   : > { %2031 = vmatpush3.bf16.msra.mxu0 %v2201_v13 }
 0x270   : > { %2032 = vmatprep.subr.bf16.mxu0 %v2402_v0 }
 0x273   : > { %2033 = vmatpush3.bf16.msra.mxu0 %v2202_v17 }
 0x274   : > { %2034 = vmatprep.subr.bf16.mxu0 %v2402_v0 }
 0x277   : > { %2035 = vmatpush3.bf16.msra.mxu0 %v2203_v18 }
 0x32b   : > { %v1289_v27 = vpop.f32.mrf.mxu1 }
 0x32c   : > { %v1290_v30 = vadd.f32 %v1289_v27, %v1253_v26 }
 0x32d   : > { %v1992_v31 = vpop.f32.mrf.mxu1 }
 0x32e   : > { %v1297_v32 = vsel %vm1296_vm8, %v1290_v30, -inf }
 0x32f   : > { %1298 = vmax.xlane.f32.xlu0 %v1297_v32  ;;  %v1292_v33 = vpop.f32.mrf.mxu1 }
 0x330   : > { %v1293_v34 = vadd.f32 %v1292_v33, %v1253_v26  ;;  %v1833_v33 = vld [vmem:[%s2814_s13] ss:$0 sm:$0xff] }
 0x331   : > { %v1993_v35 = vpop.f32.mrf.mxu1 }
 0x332   : > { %v1300_v36 = vsel %vm1296_vm8, %v1293_v34, -inf }
 0x333   : > { %1301 = vmax.xlane.f32.xlu0 %v1300_v36 }
 0x3b8   : > { %v1299_v37 = vpop.xlane.xlu0 %1298 }
 0x3b9   : > { %v1303_v38 = vsub.f32 %v1290_v30, %v1299_v37 }
 0x3bb   : > { %v1305_v39 = vmul.f32 1.442695, %v1303_v38 }
 0x3bc   : > { %v1302_v40 = vpop.xlane.xlu0 %1301 }
 0x3bd   : > { %2208 = vpow2.f32 %v1305_v39  ;;  %v1304_v41 = vsub.f32 %v1293_v34, %v1302_v40 }
 0x3bf   : > { %v1307_v42 = vmul.f32 1.442695, %v1304_v41 }
 0x3c1   : > { %2210 = vpow2.f32 %v1307_v42 }
 0x3ca   : > { %v2209_v43 = vpop.eup %2208 }
 0x3cb   : > { %v1309_v44 = vsel %vm1296_vm8, %v2209_v43, 0.0 }
 0x3cc   : > { %1310 = vadd.xlane.f32.xlu0 %v1309_v44 }
 0x3ce   : > { %v2211_v45 = vpop.eup %2210 }
 0x3cf   : > { %v1312_v46 = vsel %vm1296_vm8, %v2211_v45, 0.0  ;;  %v1317_v47 = vpack.c.bf16 %v2211_v45, %v2209_v43 }
 0x3d0   : > { %1313 = vadd.xlane.f32.xlu1 %v1312_v46 }
 0x3d1   : > { %1997 = vmatmul.mubr.msk.bf16.vlgmr.msra.gmra.mxu1 %vm1296_vm8, %v1317_v47 }
 0x3d2   : > { %2016 = vmatprep.mubr.msk.bf16.mxu1 %vm2403_vm0, %v2402_v0  ;;  %2001 = vmatpush3.bf16.msra.mxu1 %v2188_v48 }
 0x3d3   : > { %2002 = vmatprep.subr.bf16.mxu1 %v2402_v0 }
 0x3d6   : > { %2003 = vmatpush3.bf16.msra.mxu1 %v2189_v49 }
 0x3d7   : > { %2004 = vmatprep.subr.bf16.mxu1 %v2402_v0 }
 0x3da   : > { %2005 = vmatpush3.bf16.msra.mxu1 %v2190_v50 }
 0x3db   : > { %2006 = vmatprep.subr.bf16.mxu1 %v2402_v0 }
 0x3de   : > { %2007 = vmatpush3.bf16.msra.mxu1 %v2191_v51 }
 0x3df   : > { %2008 = vmatprep.subr.bf16.mxu1 %v2402_v0 }
 0x3e2   : > { %2009 = vmatpush3.bf16.msra.mxu1 %v2192_v52 }
 0x3e3   : > { %2010 = vmatprep.subr.bf16.mxu1 %v2402_v0 }
 0x3e6   : > { %2011 = vmatpush3.bf16.msra.mxu1 %v2193_v53 }
 0x3e7   : > { %2012 = vmatprep.subr.bf16.mxu1 %v2402_v0 }
 0x3ea   : > { %2013 = vmatpush3.bf16.msra.mxu1 %v2194_v54 }
 0x3eb   : > { %2014 = vmatprep.subr.bf16.mxu1 %v2402_v0 }
 0x3ee   : > { %2015 = vmatpush3.bf16.msra.mxu1 %v2195_v55 }
 0x455   : > { %v1311_v60 = vpop.xlane.xlu0 %1310 }
 0x456   : > { %2212 = vrcp.f32 %v1311_v60 }
 0x459   : > { %v1314_v61 = vpop.xlane.xlu1 %1313 }
 0x45a   : > { %2214 = vrcp.f32 %v1314_v61 }
 0x463   : > { %v2213_v1 = vpop.eup %2212 }
 0x467   : > { %v2215_v4 = vpop.eup %2214 }
 0x491   : > { %v1355_v63 = vpop.f32.mrf.mxu1 }
 0x492   : > { %v1362_v3 = vmul.f32 %v2213_v1, %v1355_v63 }
 0x493   : > { %v1998_v2 = vpop.f32.mrf.mxu1 }
 0x494   : > { %v1364_v8 = vmax.f32 %v1362_v3, 0.0 }
 0x495   : > { %v1358_v5 = vpop.f32.mrf.mxu1 }
 0x496   : > { %v1363_v6 = vmul.f32 %v2215_v4, %v1358_v5 }
 0x497   : > { %v1999_v7 = vpop.f32.mrf.mxu1 }
 0x498   : > { %v1365_v9 = vmax.f32 %v1363_v6, 0.0 }
 0x49a   : > { %v1366_v10 = vpack.c.bf16 %v1365_v9, %v1364_v8 }
 0x49c   : > { %2017 = vmatmul.mubr.bf16.vlgmr.msra.gmra.mxu1 %v1366_v10 }
 0x55c   : > { %v1472_v15 = vpop.f32.mrf.mxu1 }
 0x55d   : > { %v1473_v20 = vadd.f32 %v1824_v19, %v1472_v15 }
 0x55e   : > { %v2018_v21 = vpop.f32.mrf.mxu1 }
 0x55f   : > { %v1479_v22 = vmul.f32 %v1473_v20, %v2703_v62 }
 0x560   : > { %v1475_v23 = vpop.f32.mrf.mxu1 }
 0x561   : > { %v1476_v24 = vadd.f32 %v1824_v19, %v1475_v23  ;;  %v1481_v26 = vmul.f32 0.7, %v1479_v22 }
 0x562   : > { %v2019_v25 = vpop.f32.mrf.mxu1 }
 0x563   : > { %v1480_v27 = vmul.f32 %v1476_v24, %v2706_v12  ;;  %v1483_v0 = vadd.f32 %v1481_v26, %v2686_v28 }
 0x565   : > { %v1482_v30 = vmul.f32 0.7, %v1480_v27 }
 0x567   : > { %v1484_v31 = vadd.f32 %v1482_v30, %v2688_v29 }
 0x569   : > { %v1485_v32 = vpack.c.bf16 %v1484_v31, %v1483_v0 }
 0x56b   : > { %2037 = vmatmul.mubr.bf16.vlgmr.msra.gmra.mxu0 %v1485_v32 }
 0x62b   : > { %v1591_v34 = vpop.f32.mrf.mxu0 }
 0x62c   : > { %v1592_v35 = vadd.f32 %v1833_v33, %v1591_v34 }
 0x62d   : > { %v2038_v36 = vpop.f32.mrf.mxu0 }
 0x62e   : > { %v1598_v37 = vadd.f32 %v1592_v35, %v2626_v14 }
 0x62f   : > { %v1594_v38 = vpop.f32.mrf.mxu0 }
 0x630   : > { %v1600_v28 = vmul.f32 %v1598_v37, %v2703_v62  ;;  %v1595_v29 = vadd.f32 %v1833_v33, %v1594_v38 }
 0x631   : > { %v2039_v39 = vpop.f32.mrf.mxu0 }
 0x632   : > { %1602 = vst [vmem:[%s560_s15] sm:$0xff] %v1600_v28  ;;  %v1599_v40 = vadd.f32 %v1595_v29, %v2632_v16 }
 0x634   : > { %v1601_v41 = vmul.f32 %v1599_v40, %v2706_v12 }
 0x636   : > { %1603 = vst [vmem:[%s560_s15 + $0x8] sm:$0xff] %v1601_v41 }
 0x637   : > { %2333 = shalt.err (!%p2330_p13)
}
 0x638   : > { %s2334_s17 = scalar_lea.hbm %s2760_s24, 256  ;;  %s2338_s22 = scalar_lea.hbm %s2815_s14, 512 }
 0x639   : > { %p2335_p8 = scmp.ne.s32.totalorder %s2760_s24, %s2334_s17  ;;  %p2339_p1 = scmp.lt.s32.totalorder %s2760_s24, %s2815_s14 }
 0x63a   : > { %p2340_p12 = scmp.lt.s32.totalorder %s2338_s22, %s2334_s17 }
 0x63b   : > { %p2336_p11 = pnand %p2335_p8, %p2522_p5 }
 0x63c   : > { %p2341_p10 = por %p2340_p12, %p2339_p1 }
 0x63d   : > { %p2337_p0 = pneg %p2336_p11 }
 0x63f   : > { %p2342_p3 = pnand %p2341_p10, %p2337_p0 }
 0x641   : > { %2345 = shalt.err (!%p2342_p3)
}
 0x642   : > { %s2407_s27 = smov 128   ;;  %s2408_s9 = smov 8  }
 0x643   : > { %2056 = dma.vmem_to_hbm [thread:$0]  (%p2522_p5), %s2754_s16, 256, %s2760_s24, %s2762_s6, %s2407_s27, %s2407_s27, %s2408_s9  }
 0x644 PF: > { %p2083_p2 = scmp.ge.s32.totalorder %s2392_s30, 2  ;;  %s1633_s25 = sand.u32 1, %s2380_s8  }
 0x645   : > { %p2833_p6 = scmp.ne.s32.totalorder %s2821_s20, 0  ;;  %s1634_s26 = scalar_lea.sflag [#allocation6], %s1633_s25 }
 0x647   : > { %p2072_p9 = pnand %p2083_p2, %p2833_p6 }
 0x649   : > { %p2073_p4 = pneg %p2072_p9 }
 0x64b   : > { %2375 = dma.done.wait (%p2073_p4), %s1634_s26, 256  }
 0x64c   : > { %2377 = vsyncadd (%p2073_p4), %s1634_s26, 4294967040  ;;  %s2834_s17 = sld [smem:[#allocation17_spill]]  ;;  %p31_p7 = scmp.ge.s32.totalorder %s2509_s1, 4  }
 0x64d   : > { %s2835_s8 = smov %s2384_s28  ;;  %s2836_s28 = smov %s2388_s29 }
 0x64e   : > { %s2838_s30 = smov %s2509_s1  ;;  %33 = sbr.rel (!%p31_p7) target bundleno = 8 (0x8), region = 139 }
 0x652   : > { %s2837_s29 = smov %s2834_s17 }
 0x653   :  { %1639 = vsyncpa [#allocation5], 1 }
 0x654   :  { %1641 = vsyncpa [#allocation5 + $0x1], 1 }
 0x655   :  { %1642 = vsyncpa [#allocation8], 1 }
 0x656   :  { %1643 = vsyncpa [#allocation11], 1 }
 0x657   :  { %1644 = vsyncpa [#allocation6], 1 }
 0x658   :  { %1646 = vsyncpa [#allocation6 + $0x1], 1 }

</bundles_post_ra>
